<compile_context>
chip_gen: v6e
topology: v6e:2x2x1
jax: 0.10.0
libtpu: 0.0.40
codegen_flags: <defaults>
</compile_context>

<pallas_src>
import functools

import jax
import jax.numpy as jnp
from jax.experimental import pallas as pl
from jax.experimental.pallas import tpu as pltpu


def _cross_modal_attention_kernel(vis_ref, aud_ref,
                                  wv_ref, bv_ref,
                                  wa_ref, ba_ref,
                                  we_ref, be_ref,
                                  out_ref,
                                  *, block_b, t_pad, t_valid, hidden):
    # ---- visual projection: one fused-row MXU matmul, rows = block_b * t_pad ----
    pv = jnp.dot(vis_ref[...], wv_ref[...],
                 preferred_element_type=jnp.float32) + bv_ref[...]            # (rows, H)

    # ---- audio projection (tiny) ----
    pa = jnp.tanh(jnp.dot(aud_ref[...], wa_ref[...],
                          preferred_element_type=jnp.float32) + ba_ref[...])  # (bb, H)

    # ---- combined = tanh(tanh(vis_proj) + aud_proj), fused in one expression ----
    # (Kept in f32 for v5e portability; on v6e/v7x this EUP/VPU stage could run
    #  in bf16 once HBM stops being the bottleneck.)
    combined = jnp.tanh(jnp.tanh(pv).reshape(block_b, t_pad, hidden)
                        + pa[:, None, :])                                     # (bb, T_pad, H)

    # ---- energy: VPU multiply + lane (H) reduce; keep the N=1 matmul off the MXU ----
    energy = (jnp.sum(combined * we_ref[...][None, :, :], axis=-1)
              + be_ref[0, 0])                                                 # (bb, T_pad)

    # ---- mask padded frames (static no-op when T % 8 == 0), stable softmax ----
    if t_pad != t_valid:
        frame = jax.lax.broadcasted_iota(jnp.int32, (block_b, t_pad), 1)
        energy = jnp.where(frame < t_valid, energy, -jnp.inf)
    m = jnp.max(energy, axis=-1, keepdims=True)
    p = jnp.exp(energy - m)
    denom = jnp.sum(p, axis=-1, keepdims=True)
    # Exact divide: denom is only (block_b, 1) values; approx reciprocal would
    # cost ~1e-3 on the row sums for zero speedup.
    out_ref[...] = (p / denom).astype(out_ref.dtype)


def _vmem_capacity_bytes():
    try:
        return int(pltpu.get_tpu_info().vmem_capacity_bytes)
    except Exception:
        return 64 * 1024 * 1024   # conservative default (v7x per-TC VMEM)


def _step_vmem_bytes(block_b, t_pad, dv, da, hidden, vis_isz, aud_isz):
    """Per-grid-step working set (double-buffered dynamic blocks + f32 temps)."""
    rows = block_b * t_pad
    dyn = 2 * rows * dv * vis_isz          # double-buffered visual block
    dyn += 2 * block_b * da * aud_isz      # double-buffered audio block
    dyn += 2 * block_b * t_pad * 4         # double-buffered output block
    inter = 4 * rows * hidden * 4          # f32 pv / combined temporaries (+slack)
    return dyn + inter


def _param_vmem_bytes(dv, da, hidden, w_isz):
    # Upper bound: weights + biases, counted double-buffered.
    return 2 * ((dv + da) * hidden * w_isz + (3 * hidden + 1) * 4)


def _choose_block_b(batch, t_pad, dv, da, hidden, vis_isz, aud_isz, budget):
    """Batch rows handled per grid step.

    Valid block_b values divide `batch` evenly and are multiples of 8 (sublane
    rule for the (block_b, Da) / (block_b, T_pad) blocks) or equal `batch`.
    Every candidate is checked against the VMEM byte budget; among the fitting
    ones we target up to ~8K fused rows per step and prefer a grid of >= 2
    steps so the "parallel" axis can use both TensorCores on v7x.
    """
    valid = sorted({d for d in range(8, batch, 8) if batch % d == 0} | {batch})
    fits = [d for d in valid
            if _step_vmem_bytes(d, t_pad, dv, da, hidden, vis_isz, aud_isz) <= budget]
    if not fits:
        # TODO(synk): very large T*Dv shapes need a second ("arbitrary") grid
        # axis over frames with a two-pass softmax; fall back to the smallest
        # legal block here.
        return min(valid)
    target_rows = 8192
    good = [d for d in fits if d * t_pad <= target_rows] or [min(fits)]
    dual = [d for d in good if d <= batch // 2]   # grid >= 2 (v7x dual-TC)
    return max(dual) if dual else max(good)


def _const_spec(shape, nbytes):
    rank = len(shape)
    idx_map = lambda b: (0,) * rank
    if nbytes >= (512 << 10):
        # Resident parameter blocks never change index; single-buffer the big
        # ones to free VMEM for the streaming visual block (matters most on
        # v7x's 64 MiB VMEM).
        return pl.BlockSpec(shape, idx_map, pipeline_mode=pl.Buffered(1))
    return pl.BlockSpec(shape, idx_map)


def cross_modal_attention(visual, audio, params):
    wv, bv, wa, ba, we, be = params
    B, T, Dv = visual.shape
    Da = audio.shape[-1]
    H = wv.shape[-1]

    # Pad frames to a multiple of 8 (sublane) only.  Padded frames are masked
    # to -inf inside the kernel and sliced off below; when T % 8 == 0 this is a
    # no-op (no extra HBM copy of `visual`).
    T_pad = ((T + 7) // 8) * 8
    if T_pad != T:
        visual = jnp.pad(visual, ((0, 0), (0, T_pad - T), (0, 0)))
    # One big (B*T_pad, Dv) @ (Dv, H) matmul instead of B tiny batched ones.
    vis2d = visual.reshape(B * T_pad, Dv)

    vis_isz = jnp.dtype(vis2d.dtype).itemsize
    aud_isz = jnp.dtype(audio.dtype).itemsize
    w_isz = jnp.dtype(wv.dtype).itemsize

    vmem_cap = _vmem_capacity_bytes()
    budget = int(0.35 * vmem_cap)
    block_b = _choose_block_b(B, T_pad, Dv, Da, H, vis_isz, aud_isz, budget)
    grid = (B // block_b,)
    rows = block_b * T_pad

    step_bytes = _step_vmem_bytes(block_b, T_pad, Dv, Da, H, vis_isz, aud_isz)
    param_bytes = _param_vmem_bytes(Dv, Da, H, w_isz)
    # Explicit scoped-VMEM limit: generous vs. the estimate, but always below
    # the physical per-core capacity (headroom for compiler-internal scratch).
    vmem_limit = int(min(int(0.78 * vmem_cap),
                         max(32 * 1024 * 1024,
                             int(1.5 * (step_bytes + param_bytes)))))

    kernel = functools.partial(_cross_modal_attention_kernel,
                               block_b=block_b, t_pad=T_pad, t_valid=T, hidden=H)

    cost = pl.CostEstimate(
        flops=int(2 * B * T_pad * Dv * H + 2 * B * Da * H + 3 * B * T_pad * H),
        transcendentals=int(2 * B * T_pad * H + B * H + B * T_pad),
        bytes_accessed=int(vis_isz * B * T_pad * Dv + aud_isz * B * Da
                           + w_isz * (Dv * H + Da * H)
                           + 4 * (3 * H + 1) + 4 * B * T_pad),
    )

    out_padded = pl.pallas_call(
        kernel,
        out_shape=jax.ShapeDtypeStruct((B, T_pad), jnp.float32),
        grid=grid,
        in_specs=[
            pl.BlockSpec((rows, Dv), lambda b: (b, 0)),        # visual (fused rows)
            pl.BlockSpec((block_b, Da), lambda b: (b, 0)),     # audio
            _const_spec(wv.shape, wv.size * w_isz),            # Wv (resident)
            _const_spec(bv.shape, bv.size * jnp.dtype(bv.dtype).itemsize),
            _const_spec(wa.shape, wa.size * w_isz),            # Wa (resident)
            _const_spec(ba.shape, ba.size * jnp.dtype(ba.dtype).itemsize),
            _const_spec(we.shape, we.size * jnp.dtype(we.dtype).itemsize),
            pl.BlockSpec(memory_space=pltpu.MemorySpace.SMEM),  # energy bias (scalar)
        ],
        out_specs=pl.BlockSpec((block_b, T_pad), lambda b: (b, 0)),
        compiler_params=pltpu.CompilerParams(
            dimension_semantics=("parallel",),   # megacore / v7x dual-TC sharding
            vmem_limit_bytes=vmem_limit,
        ),
        cost_estimate=cost,
    )(vis2d, audio, wv, bv, wa, ba, we, be)

    return out_padded[:, :T]


if __name__ == "__main__":
    key = jax.random.PRNGKey(0)
    B, T, Dv, Da, H = 2, 8, 32, 16, 32
    ks = jax.random.split(key, 8)

    visual = jax.random.normal(ks[0], (B, T, Dv), jnp.float32)
    audio = jax.random.normal(ks[1], (B, Da), jnp.float32)

    # Deterministic synthetic parameter init (xavier-uniform weights,
    # torch-default uniform biases).
    def xavier(k, fan_in, fan_out):
        limit = (6.0 / (fan_in + fan_out)) ** 0.5
        return jax.random.uniform(k, (fan_in, fan_out), jnp.float32, -limit, limit)

    wv = xavier(ks[2], Dv, H)                          # vis_proj.weight^T
    wa = xavier(ks[3], Da, H)                          # aud_proj.weight^T
    we = xavier(ks[4], H, 1).reshape(1, H)             # energy.weight, stored (1, H)
    bv = jax.random.uniform(ks[5], (1, H), jnp.float32,
                            -1.0 / Dv ** 0.5, 1.0 / Dv ** 0.5)
    ba = jax.random.uniform(ks[6], (1, H), jnp.float32,
                            -1.0 / Da ** 0.5, 1.0 / Da ** 0.5)
    be = jax.random.uniform(ks[7], (1, 1), jnp.float32,
                            -1.0 / H ** 0.5, 1.0 / H ** 0.5)
    params = (wv, bv, wa, ba, we, be)

    out = cross_modal_attention(visual, audio, params)
    out = jax.block_until_ready(out)

    # Plain-JAX reference of the PyTorch forward.
    pv_ref = jnp.tanh(visual @ wv + bv[0])
    pa_ref = jnp.tanh(audio @ wa + ba[0])
    comb_ref = jnp.tanh(pv_ref + pa_ref[:, None, :])
    energy_ref = jnp.einsum('bth,h->bt', comb_ref, we[0]) + be[0, 0]
    attn_ref = jax.nn.softmax(energy_ref, axis=-1)

    assert out.shape == (B, T)
    assert jnp.allclose(out, attn_ref, atol=1e-3, rtol=1e-3)
    assert jnp.allclose(jnp.sum(out, axis=-1), 1.0, atol=1e-3)
    print("KERNEL_OK")
</pallas_src>

<mosaic_0001>
module attributes {stable_mosaic.version = 11 : i64} {
  func.func @_cross_modal_attention_kernel(%arg0: i32, %arg1: memref<16x32xf32, #tpu.memory_space<vmem>>, %arg2: memref<2x16xf32, #tpu.memory_space<vmem>>, %arg3: memref<32x32xf32, #tpu.memory_space<vmem>>, %arg4: memref<1x32xf32, #tpu.memory_space<vmem>>, %arg5: memref<16x32xf32, #tpu.memory_space<vmem>>, %arg6: memref<1x32xf32, #tpu.memory_space<vmem>>, %arg7: memref<1x32xf32, #tpu.memory_space<vmem>>, %arg8: memref<1x1xf32, #tpu.memory_space<smem>>, %arg9: memref<2x8xf32, #tpu.memory_space<vmem>>) attributes {dimension_semantics = [#tpu.dimension_semantics<parallel>], iteration_bounds = array<i64: 1>, scalar_prefetch = 0 : i64, scratch_operands = 0 : i64, tpu.core_type = #tpu.core_type<tc>, window_params = [{transform_indices = @transform_0, window_bounds = array<i64: 16, 32>}, {transform_indices = @transform_1, window_bounds = array<i64: 2, 16>}, {pipeline_mode = #tpu.pipeline_mode<synchronous>, transform_indices = @transform_2, window_bounds = array<i64: 32, 32>}, {pipeline_mode = #tpu.pipeline_mode<synchronous>, transform_indices = @transform_3, window_bounds = array<i64: 1, 32>}, {pipeline_mode = #tpu.pipeline_mode<synchronous>, transform_indices = @transform_4, window_bounds = array<i64: 16, 32>}, {pipeline_mode = #tpu.pipeline_mode<synchronous>, transform_indices = @transform_5, window_bounds = array<i64: 1, 32>}, {pipeline_mode = #tpu.pipeline_mode<synchronous>, transform_indices = @transform_6, window_bounds = array<i64: 1, 32>}, {transform_indices = @transform_7, window_bounds = array<i64: 1, 1>}, {transform_indices = @transform_8, window_bounds = array<i64: 2, 8>}]} {
    %c0 = arith.constant 0 : index
    %c0_0 = arith.constant 0 : index
    %0 = vector.load %arg1[%c0, %c0_0] : memref<16x32xf32, #tpu.memory_space<vmem>>, vector<16x32xf32>
    %c0_1 = arith.constant 0 : index
    %c0_2 = arith.constant 0 : index
    %1 = vector.load %arg3[%c0_1, %c0_2] : memref<32x32xf32, #tpu.memory_space<vmem>>, vector<32x32xf32>
    %cst = arith.constant dense<0.000000e+00> : vector<16x32xf32>
    %2 = tpu.matmul %0, %1, %cst {dimension_numbers = #tpu.dot_dimension_numbers<[1], [0], [0], [1], [0, 0, 1, 1], [], []>} : vector<16x32xf32>, vector<32x32xf32>, vector<16x32xf32> -> vector<16x32xf32>
    %c0_3 = arith.constant 0 : index
    %c0_4 = arith.constant 0 : index
    %3 = vector.load %arg4[%c0_3, %c0_4] : memref<1x32xf32, #tpu.memory_space<vmem>>, vector<1x32xf32>
    %4 = vector.broadcast %3 : vector<1x32xf32> to vector<16x32xf32>
    %5 = arith.addf %2, %4 : vector<16x32xf32>
    %c0_5 = arith.constant 0 : index
    %c0_6 = arith.constant 0 : index
    %6 = vector.load %arg2[%c0_5, %c0_6] : memref<2x16xf32, #tpu.memory_space<vmem>>, vector<2x16xf32>
    %c0_7 = arith.constant 0 : index
    %c0_8 = arith.constant 0 : index
    %7 = vector.load %arg5[%c0_7, %c0_8] : memref<16x32xf32, #tpu.memory_space<vmem>>, vector<16x32xf32>
    %cst_9 = arith.constant dense<0.000000e+00> : vector<2x32xf32>
    %8 = tpu.matmul %6, %7, %cst_9 {dimension_numbers = #tpu.dot_dimension_numbers<[1], [0], [0], [1], [0, 0, 1, 1], [], []>} : vector<2x16xf32>, vector<16x32xf32>, vector<2x32xf32> -> vector<2x32xf32>
    %c0_10 = arith.constant 0 : index
    %c0_11 = arith.constant 0 : index
    %9 = vector.load %arg6[%c0_10, %c0_11] : memref<1x32xf32, #tpu.memory_space<vmem>>, vector<1x32xf32>
    %10 = vector.broadcast %9 : vector<1x32xf32> to vector<2x32xf32>
    %11 = arith.addf %8, %10 : vector<2x32xf32>
    %12 = math.tanh %11 : vector<2x32xf32>
    %13 = math.tanh %5 : vector<16x32xf32>
    %14 = vector.shape_cast %13 : vector<16x32xf32> to vector<2x8x32xf32>
    %15 = vector.shape_cast %12 : vector<2x32xf32> to vector<2x1x32xf32>
    %16 = vector.broadcast %15 : vector<2x1x32xf32> to vector<2x8x32xf32>
    %17 = arith.addf %14, %16 : vector<2x8x32xf32>
    %18 = math.tanh %17 : vector<2x8x32xf32>
    %c0_12 = arith.constant 0 : index
    %c0_13 = arith.constant 0 : index
    %19 = vector.load %arg7[%c0_12, %c0_13] : memref<1x32xf32, #tpu.memory_space<vmem>>, vector<1x32xf32>
    %20 = vector.shape_cast %19 : vector<1x32xf32> to vector<1x1x32xf32>
    %21 = vector.broadcast %20 : vector<1x1x32xf32> to vector<2x8x32xf32>
    %22 = arith.mulf %18, %21 : vector<2x8x32xf32>
    %cst_14 = arith.constant dense<0.000000e+00> : vector<2x8xf32>
    %23 = vector.multi_reduction <add>, %22, %cst_14 [2] : vector<2x8x32xf32> to vector<2x8xf32>
    %c0_15 = arith.constant 0 : index
    %c0_16 = arith.constant 0 : index
    %24 = memref.load %arg8[%c0_15, %c0_16] : memref<1x1xf32, #tpu.memory_space<smem>>
    %25 = vector.broadcast %24 : f32 to vector<2x8xf32>
    %26 = arith.addf %23, %25 : vector<2x8xf32>
    %cst_17 = arith.constant dense<0xFF800000> : vector<2xf32>
    %27 = vector.multi_reduction <maximumf>, %26, %cst_17 [1] : vector<2x8xf32> to vector<2xf32>
    %28 = vector.shape_cast %27 : vector<2xf32> to vector<2x1xf32>
    %29 = vector.broadcast %28 : vector<2x1xf32> to vector<2x8xf32>
    %30 = arith.subf %26, %29 : vector<2x8xf32>
    %31 = math.exp %30 : vector<2x8xf32>
    %cst_18 = arith.constant dense<0.000000e+00> : vector<2xf32>
    %32 = vector.multi_reduction <add>, %31, %cst_18 [1] : vector<2x8xf32> to vector<2xf32>
    %33 = vector.shape_cast %32 : vector<2xf32> to vector<2x1xf32>
    %34 = vector.broadcast %33 : vector<2x1xf32> to vector<2x8xf32>
    %35 = arith.divf %31, %34 : vector<2x8xf32>
    %c0_19 = arith.constant 0 : index
    %c0_20 = arith.constant 0 : index
    %36 = vector.load %arg9[%c0_19, %c0_20] : memref<2x8xf32, #tpu.memory_space<vmem>>, vector<2x8xf32>
    tpu.vector_store %arg9[%c0_19, %c0_20], %35 {strides = array<i32>} : memref<2x8xf32, #tpu.memory_space<vmem>>, vector<2x8xf32>,
    return
  }
  func.func @transform_0(%arg0: i32) -> (i32, i32) {
    %c0_i32 = arith.constant 0 : i32
    %c0_i32_0 = arith.constant 0 : i32
    return %arg0, %c0_i32 : i32, i32
  }
  func.func @transform_1(%arg0: i32) -> (i32, i32) {
    %c0_i32 = arith.constant 0 : i32
    %c0_i32_0 = arith.constant 0 : i32
    return %arg0, %c0_i32 : i32, i32
  }
  func.func @transform_2(%arg0: i32) -> (i32, i32) {
    %c0_i32 = arith.constant 0 : i32
    %c0_i32_0 = arith.constant 0 : i32
    %c0_i32_1 = arith.constant 0 : i32
    return %c0_i32, %c0_i32_0 : i32, i32
  }
  func.func @transform_3(%arg0: i32) -> (i32, i32) {
    %c0_i32 = arith.constant 0 : i32
    %c0_i32_0 = arith.constant 0 : i32
    %c0_i32_1 = arith.constant 0 : i32
    return %c0_i32, %c0_i32_0 : i32, i32
  }
  func.func @transform_4(%arg0: i32) -> (i32, i32) {
    %c0_i32 = arith.constant 0 : i32
    %c0_i32_0 = arith.constant 0 : i32
    %c0_i32_1 = arith.constant 0 : i32
    return %c0_i32, %c0_i32_0 : i32, i32
  }
  func.func @transform_5(%arg0: i32) -> (i32, i32) {
    %c0_i32 = arith.constant 0 : i32
    %c0_i32_0 = arith.constant 0 : i32
    %c0_i32_1 = arith.constant 0 : i32
    return %c0_i32, %c0_i32_0 : i32, i32
  }
  func.func @transform_6(%arg0: i32) -> (i32, i32) {
    %c0_i32 = arith.constant 0 : i32
    %c0_i32_0 = arith.constant 0 : i32
    %c0_i32_1 = arith.constant 0 : i32
    return %c0_i32, %c0_i32_0 : i32, i32
  }
  func.func @transform_7(%arg0: i32) -> (i32, i32) {
    %c0_i32 = arith.constant 0 : i32
    %c0_i32_0 = arith.constant 0 : i32
    %c0_i32_1 = arith.constant 0 : i32
    return %c0_i32, %c0_i32_0 : i32, i32
  }
  func.func @transform_8(%arg0: i32) -> (i32, i32) {
    %c0_i32 = arith.constant 0 : i32
    %c0_i32_0 = arith.constant 0 : i32
    return %arg0, %c0_i32 : i32, i32
  }
}

</mosaic_0001>

<bundles_post_ra>
// kernel: tpu_custom_call.1
= control target key start
LH: loop header
LB: loop body
LE: loop exit
PB: predicated region body
PF: predicated region fallthrough
CT: control target
= control target key end

     0   :  { %14 = vsyncpa [#allocation4], 0  ;;  %s664_s0 = inlined_call_operand.hbm [shape: f32[16,32], index: 0, kind: input, shape index: {}]   ;;  %s665_s1 = inlined_call_operand.vmem [shape: f32[2,16], index: 1, kind: input, shape index: {}]   ;;  %s666_s2 = inlined_call_operand.hbm [shape: f32[32,32], index: 2, kind: input, shape index: {}]   ;;  %s667_s3 = inlined_call_operand.vmem [shape: f32[1,32], index: 3, kind: input, shape index: {}]   ;;  %s668_s4 = inlined_call_operand.hbm [shape: f32[16,32], index: 4, kind: input, shape index: {}]   ;;  %s669_s5 = inlined_call_operand.vmem [shape: f32[1,32], index: 5, kind: input, shape index: {}]   ;;  %s670_s6 = inlined_call_operand.vmem [shape: f32[1,32], index: 6, kind: input, shape index: {}]   ;;  %s671_s7 = inlined_call_operand.<no memory space> [shape: f32[1,1], index: 7, kind: input, shape index: {}]   ;;  %s672_s8 = inlined_call_operand.hbm [shape: f32[2,8], index: 8, kind: output, shape index: {}]  }
   0x1   :  { %15 = vsyncpa [#allocation7], 0 }
   0x2   :  { %16 = vsyncpa [#allocation5], 0  ;;  %s566_s27 = smov [#allocation6]   ;;  %s567_s29 = smov [#allocation3]  }
   0x3   :  { %s36_s28 = sshll.u32 %s566_s27, 4  ;;  %s22_s30 = sshll.u32 %s567_s29, 4  ;;  %s37_s28 = int_to_ptr.vmem [resolvable:$true] %s36_s28  ;;  %s23_s30 = int_to_ptr.vmem [resolvable:$true] %s22_s30 }
   0x4   :  { %s488_s9 = scalar_lea.vmem %s37_s28, 512  ;;  %p493_p1 = scmp.lt.s32.totalorder %s37_s28, %s37_s28 }
   0x5   :  { %p489_p0 = scmp.ne.s32.totalorder %s37_s28, %s488_s9  ;;  %p494_p2 = scmp.lt.s32.totalorder %s488_s9, %s488_s9 }
   0x7   :  { %p495_p3 = por %p494_p2, %p493_p1 }
   0x9   :  { %p496_p4 = pnand %p495_p3, %p489_p0 }
   0xb   :  { %499 = shalt.err (!%p496_p4)
}
   0xc   :  { %s568_s10 = smov 128   ;;  %s569_s11 = smov 8  }
   0xd   :  { %42 = dma.hbm_to_vmem [thread:$0]  %s666_s2, 512, %s37_s28, [#allocation7], %s568_s10, %s568_s10, %s569_s11  }
   0xe   :  { %s508_s14 = scalar_lea.vmem %s23_s30, 256  ;;  %p513_p6 = scmp.lt.s32.totalorder %s23_s30, %s23_s30 }
   0xf   :  { %p509_p5 = scmp.ne.s32.totalorder %s23_s30, %s508_s14  ;;  %p514_p7 = scmp.lt.s32.totalorder %s508_s14, %s508_s14 }
  0x11   :  { %p515_p8 = por %p514_p7, %p513_p6 }
  0x13   :  { %p516_p9 = pnand %p515_p8, %p509_p5 }
  0x15   :  { %519 = shalt.err (!%p516_p9)
}
  0x16   :  { %28 = dma.hbm_to_vmem [thread:$0]  %s664_s0, 256, %s23_s30, [#allocation4], %s568_s10, %s568_s10, %s569_s11  }
  0x17   :  { %s570_s17 = smov [#allocation8]  }
  0x18   :  { %s50_s18 = sshll.u32 %s570_s17, 4  ;;  %s51_s18 = int_to_ptr.vmem [resolvable:$true] %s50_s18 }
  0x19   :  { %s528_s19 = scalar_lea.vmem %s51_s18, 256  ;;  %p533_p11 = scmp.lt.s32.totalorder %s51_s18, %s51_s18 }
  0x1a   :  { %p529_p10 = scmp.ne.s32.totalorder %s51_s18, %s528_s19  ;;  %p534_p12 = scmp.lt.s32.totalorder %s528_s19, %s528_s19 }
  0x1c   :  { %p535_p13 = por %p534_p12, %p533_p11 }
  0x1e   :  { %p536_p0 = pnand %p535_p13, %p529_p10 }
  0x20   :  { %539 = shalt.err (!%p536_p0)
}
  0x21   :  { %56 = dma.hbm_to_vmem [thread:$0]  %s668_s4, 256, %s51_s18, [#allocation7], %s568_s10, %s568_s10, %s569_s11  }
  0x22   :  { %560 = dma.done.wait [#allocation4], 256  }
  0x23   :  { %561 = vsyncadd [#allocation4], 4294967040 }
  0x24   :  { %562 = dma.done.wait [#allocation7], 768  }
  0x25   :  { %563 = vsyncadd [#allocation7], 4294966528  ;;  %v571_v0 = vmov 0.0   ;;  %vm572_vm0 = vmmov 0   ;;  %v77_v1 = vld [vmem:[#allocation6 + $0x18] sm:$0xff]  ;;  %v169_v2 = vld [vmem:[#allocation8 + $0x8] sm:$0xff]  ;;  %v258_v17 = vlaneseq  ;;  %v307_v45 = vstv %s671_s7 }
  0x26   :  { %443 = vmatprep.subr.mxu1 %v571_v0  ;;  %447 = vmatprep.mubr.msk.f32.mxu1 %vm572_vm0, %v571_v0  ;;  %v76_v3 = vld [vmem:[#allocation6 + $0x10] sm:$0xff]  ;;  %v168_v4 = vld [vmem:[#allocation8] sm:$0xff]  ;;  %vm177_vm1 = vcmask 130048   ;;  %v75_v6 = vld [vmem:[#allocation6 + $0x8] sm:$0xff]  ;;  %vm85_vm2 = vcmask 261120   ;;  %vm322_vm3 = vcmask 1041409  }
  0x27   :  { %432 = vmatprep.subr.mxu0 %v77_v1  ;;  %444 = vmatpush3.msra.mxu1 %v169_v2  ;;  %v167_v5 = vld [vmem:[%s665_s1] sm:$0x3]  ;;  %v74_v8 = vld [vmem:[#allocation6] sm:$0xff]  ;;  %v73_v9 = vld [vmem:[#allocation3 + $0x8] sm:$0xff]  ;;  %v573_v15 = vmov 1966171168  }
  0x28   :  { %433 = vmatpush3.msra.mxu0 %v77_v1  ;;  %445 = vmatprep.subr.mxu1 %v571_v0  ;;  %v72_v7 = vld [vmem:[#allocation3] sm:$0xff]  ;;  %v256_v16 = vunpack.c.l.s4 %v573_v15  ;;  %v641_v23 = vshrl.u32 %v258_v17, 7  ;;  %v313_v44 = vand.u32 127, %v258_v17  ;;  %vm325_vm4 = vcmask 58368  }
  0x29   :  { %434 = vmatprep.subr.mxu0 %v76_v3  ;;  %446 = vmatpush3.msra.mxu1 %v168_v4  ;;  %v420_v10 = vld [vmem:[%s669_s5] ss:$0 sm:$0xff]  ;;  %v574_v55 = vmov 0  }
  0x2a   :  { %435 = vmatpush3.msra.mxu0 %v76_v3  ;;  %448 = vmatmul.mubr.msk.f32.vlgmr.msra.gmra.mxu1 %vm177_vm1, %v167_v5  ;;  %v417_v14 = vld [vmem:[%s667_s3] ss:$0 sm:$0xff]  ;;  %v257_v22 = vunpack.c.0.s8 %v256_v16  ;;  %v279_v27 = vsub.s32 0, %v641_v23  ;;  %v316_v47 = vsub.s32 %v313_v44, %v641_v23  ;;  %v336_v56 = vsub.s32 1, %v641_v23 }
  0x2b   :  { %436 = vmatprep.subr.mxu0 %v75_v6  ;;  %440 = vmatprep.mubr.msk.f32.mxu0 %vm85_vm2, %v72_v7  ;;  %v422_v37 = vld [vmem:[%s670_s6] ss:$0 sm:$0xff]  ;;  %s575_s6 = smov [#allocation9]  }
  0x2c   :  { %437 = vmatpush3.msra.mxu0 %v75_v6  ;;  %v260_v24 = vsub.s32 %v257_v22, %v641_v23  ;;  %461 = vset.pattern.permute.xlu0 %v574_v55  ;;  %s407_s7 = sshll.u32 %s575_s6, 4  ;;  %s408_s7 = int_to_ptr.vmem [resolvable:$true] %s407_s7 }
  0x2d   :  { %438 = vmatprep.subr.mxu0 %v74_v8  ;;  %460 = vset.pattern.permute.xlu1 %v574_v55  ;;  %s540_s26 = scalar_lea.vmem %s408_s7, 32  ;;  %p545_p2 = scmp.lt.s32.totalorder %s408_s7, %s408_s7 }
  0x2e   :  { %439 = vmatpush3.msra.mxu0 %v74_v8  ;;  %p541_p1 = scmp.ne.s32.totalorder %s408_s7, %s540_s26  ;;  %p546_p3 = scmp.lt.s32.totalorder %s540_s26, %s540_s26 }
  0x2f   :  { %441 = vmatmul.mubr.msk.f32.vlgmr.msra.gmra.mxu0 %vm85_vm2, %v73_v9 }
  0x30   :  { %p547_p4 = por %p546_p3, %p545_p2 }
  0x32   :  { %p548_p5 = pnand %p547_p4, %p541_p1 }
  0xea   :  { %v247_v11 = vpop.f32.mrf.mxu1 }
  0xeb   :  { %v248_v12 = vadd.f32 %v420_v10, %v247_v11 }
  0xec   :  { %v449_v13 = vpop.f32.mrf.mxu1 }
  0xed   :  { %462 = vtanh.f32 %v248_v12 }
  0xef   :  { %v442_v18 = vpop.f32.mrf.mxu0 }
  0xf0   :  { %v164_v19 = vadd.f32 %v442_v18, %v417_v14 }
  0xf1   :  { %v158_v20 = vpop.f32.mrf.mxu0 }
  0xf2   :  { %v159_v21 = vadd.f32 %v417_v14, %v158_v20 }
  0xf4   :  { %464 = vtanh.f32 %v159_v21 }
  0xf5   :  { %466 = vtanh.f32 %v164_v19 }
  0xfa   :  { %v463_v25 = vpop.eup %462 }
  0xfb   :  { %v261_v26 = vrot.slane %v463_v25, %v260_v24 }
  0xfd   :  { %v262_v28 = vcombine.high %v261_v26, %v261_v26  ;;  %v269_v29 = vrot.slane %v261_v26, %v260_v24 }
  0xff   :  { %v276_v30 = vrot.slane %v262_v28, %v260_v24  ;;  %v280_v31 = vrot.slane %v269_v29, %v279_v27 }
 0x101   :  { %v465_v32 = vpop.eup %464  ;;  %v284_v33 = vrot.slane %v276_v30, %v279_v27 }
 0x102   :  { %v467_v34 = vpop.eup %466  ;;  %v287_v35 = vadd.f32 %v465_v32, %v280_v31 }
 0x103   :  { %v288_v36 = vadd.f32 %v467_v34, %v284_v33 }
 0x104   :  { %468 = vtanh.f32 %v287_v35 }
 0x105   :  { %470 = vtanh.f32 %v288_v36 }
 0x111   :  { %v469_v38 = vpop.eup %468 }
 0x112   :  { %v471_v39 = vpop.eup %470  ;;  %v298_v40 = vmul.f32 %v469_v38, %v422_v37 }
 0x113   :  { %v299_v42 = vmul.f32 %v471_v39, %v422_v37 }
 0x114   :  { %v300_v41 = vsel %vm85_vm2, %v298_v40, 0.0 }
 0x115   :  { %301 = vadd.xlane.f32.xlu0 %v300_v41  ;;  %v303_v43 = vsel %vm85_vm2, %v299_v42, 0.0 }
 0x119   :  { %304 = vadd.xlane.f32.xlu0 %v303_v43 }
 0x19e   :  { %v302_v46 = vpop.xlane.xlu0 %301 }
 0x19f   :  { %v308_v48 = vadd.f32 %v307_v45, %v302_v46 }
 0x1a1   :  { %v317_v51 = vrot.slane %v308_v48, %v316_v47 }
 0x1a2   :  { %v305_v49 = vpop.xlane.xlu0 %304 }
 0x1a3   :  { %v309_v50 = vadd.f32 %v307_v45, %v305_v49 }
 0x1a5   :  { %v321_v52 = vrot.slane %v309_v50, %v316_v47 }
 0x1a7   :  { %v323_v53 = vsel %vm322_vm3, %v321_v52, %v317_v51 }
 0x1a8   :  { %v326_v54 = vsel %vm325_vm4, %v323_v53, -inf }
 0x1a9   :  { %327 = vmax.xlane.f32.xlu1 %v326_v54 }
 0x232   :  { %v328_v57 = vpop.xlane.xlu1 %327 }
 0x233   :  { %v333_v58 = vrot.slane %v328_v57, %v279_v27  ;;  %v337_v59 = vrot.slane %v328_v57, %v336_v56 }
 0x235   :  { %v340_v60 = vsub.f32 %v308_v48, %v333_v58  ;;  %v341_v61 = vsub.f32 %v309_v50, %v337_v59 }
 0x237   :  { %v342_v62 = vmul.f32 1.442695, %v340_v60  ;;  %v344_v63 = vmul.f32 1.442695, %v341_v61 }
 0x239   :  { %472 = vpow2.f32 %v342_v62 }
 0x23a   :  { %474 = vpow2.f32 %v344_v63 }
 0x246   :  { %v473_v0 = vpop.eup %472 }
 0x247   :  { %v475_v1 = vpop.eup %474  ;;  %349 = vperm.xlu1 %460, %v473_v0  }
 0x248   :  { %352 = vperm.xlu0 %461, %v475_v1  }
 0x2c2   :  { %v350_v2 = vpop.permute.xlu1 %349 }
 0x2c3   :  { %v353_v3 = vpop.permute.xlu0 %352  ;;  %v357_v4 = vrot.slane %v350_v2, %v316_v47 }
 0x2c4   :  { %v361_v5 = vrot.slane %v353_v3, %v316_v47 }
 0x2c6   :  { %v362_v6 = vsel %vm322_vm3, %v361_v5, %v357_v4 }
 0x2c7   :  { %v364_v7 = vsel %vm325_vm4, %v362_v6, 0.0 }
 0x2c8   :  { %365 = vadd.xlane.f32.xlu1 %v364_v7 }
 0x351   :  { %v366_v8 = vpop.xlane.xlu1 %365 }
 0x352   :  { %v371_v9 = vrot.slane %v366_v8, %v279_v27  ;;  %v375_v10 = vrot.slane %v366_v8, %v336_v56 }
 0x354   :  { %476 = vrcp.f32 %v371_v9 }
 0x355   :  { %478 = vrcp.f32 %v375_v10 }
 0x361   :  { %v477_v11 = vpop.eup %476 }
 0x362   :  { %v379_v12 = vmul.f32 %v477_v11, %v473_v0  ;;  %v479_v13 = vpop.eup %478 }
 0x363   :  { %v381_v14 = vmul.f32 %v479_v13, %v475_v1 }
 0x364   :  { %385 = vperm.xlu0 %461, %v379_v12  }
 0x368   :  { %388 = vperm.xlu0 %461, %v381_v14  }
 0x3df   :  { %v386_v15 = vpop.permute.xlu0 %385 }
 0x3e0   :  { %v393_v17 = vrot.slane %v386_v15, %v316_v47 }
 0x3e3   :  { %v389_v16 = vpop.permute.xlu0 %388 }
 0x3e4   :  { %v397_v18 = vrot.slane %v389_v16, %v316_v47 }
 0x3e6   :  { %v398_v19 = vsel %vm322_vm3, %v397_v18, %v393_v17 }
 0x3e7   :  { %400 = vst.msk [vmem:[#allocation9] sm:$0x3] %vm325_vm4, %v398_v19 }
 0x3e8   :  { %551 = shalt.err (!%p548_p5)
}
 0x3e9   :  { %410 = dma.vmem_to_hbm [thread:$0]  %s408_s7, 32, %s672_s8, [#allocation5]  }
 0x3ea   :  { %564 = dma.done.wait [#allocation5], 32  }
 0x3eb   :  { %565 = vsyncadd [#allocation5], 4294967264 }
 0x3ec   :  { %414 = vsyncpa [#allocation4], 1 }
 0x3ed   :  { %415 = vsyncpa [#allocation7], 1 }
 0x3ee   :  { %416 = vsyncpa [#allocation5], 1 }

</bundles_post_ra>
